<compile_context>
chip_gen: v7x
topology: tpu7x:2x2x1
jax: 0.10.0
libtpu: 0.0.40
codegen_flags: <defaults>
</compile_context>

<pallas_src>
import functools

import jax
import jax.numpy as jnp
from jax.experimental import pallas as pl
from jax.experimental.pallas import tpu as pltpu


def _softplus(z):
    # numerically-stable softplus, matches F.softplus semantics
    return jnp.log1p(jnp.exp(-jnp.abs(z))) + jnp.maximum(z, 0.0)


def dynamics_kernel(xa_ref, xpad_ref, eps_ref,
                    w1_ref, b1_ref,
                    w2_ref, b2_ref,
                    whead_ref, bhead_ref,
                    maxls_ref, minls_ref,
                    out_ref):
    # matmul compute dtype follows the weight storage dtype (f32 or bf16);
    # accumulation is always f32 via preferred_element_type.
    cdt = w1_ref.dtype
    out_size = maxls_ref.shape[1]

    # ---- encoder (VectorEncoderWithAction): concat(x, action) -> 2x (Linear + ReLU)
    xa = xa_ref[...]
    h = jnp.dot(xa.astype(cdt), w1_ref[...], preferred_element_type=jnp.float32)
    h = jnp.maximum(h + b1_ref[...], 0.0)

    h = jnp.dot(h.astype(cdt), w2_ref[...], preferred_element_type=jnp.float32)
    h = jnp.maximum(h + b2_ref[...], 0.0)

    # ---- fused heads: [mu | logstd] = h @ [Wmu | Wls] + [bmu | bls]
    head = jnp.dot(h.astype(cdt), whead_ref[...],
                   preferred_element_type=jnp.float32) + bhead_ref[...]
    mu = head[:, :out_size]
    logstd = head[:, out_size:]

    max_ls = maxls_ref[...]   # (1, out_size) broadcasts over the batch block
    min_ls = minls_ref[...]
    logstd = max_ls - _softplus(max_ls - logstd)
    logstd = min_ls + _softplus(logstd - min_ls)

    # ---- reparameterized sample and residual add, single lane-dense store
    pred = mu + jnp.exp(logstd) * eps_ref[...]
    out_ref[...] = xpad_ref[...] + pred   # xpad = [x | 0]


def dynamics_forward(x, action, eps, params, *,
                     matmul_dtype=jnp.float32, block_rows=256):
    """params = (w1, b1, w2, b2, whead, bhead, max_logstd, min_logstd)."""
    B, obs_size = x.shape
    out_size = obs_size + 1
    w1, b1, w2, b2, whead, bhead, max_ls, min_ls = params
    # matmul operands may be bf16 (v6e/v7x fast path); biases stay f32.
    w1 = w1.astype(matmul_dtype)
    w2 = w2.astype(matmul_dtype)
    whead = whead.astype(matmul_dtype)

    # fused encoder input and lane-padded residual ([x | 0]) built in the wrapper
    xa = jnp.concatenate([x, action], axis=1).astype(jnp.float32)
    xpad = jnp.concatenate(
        [x.astype(jnp.float32), jnp.zeros((B, 1), jnp.float32)], axis=1)
    eps = eps.astype(jnp.float32)
    k_in = xa.shape[1]
    hidden = w1.shape[1]

    # --- batch blocking: sublane-align, single block for small B, 256-row
    #     blocks (parallel grid) for large B.
    bp = ((B + 7) // 8) * 8
    blk = bp if bp <= block_rows else block_rows
    bp = ((bp + blk - 1) // blk) * blk
    pad = bp - B
    if pad:
        xa = jnp.pad(xa, ((0, pad), (0, 0)))
        xpad = jnp.pad(xpad, ((0, pad), (0, 0)))
        eps = jnp.pad(eps, ((0, pad), (0, 0)))
    grid = (bp // blk,)

    row_spec = lambda cols: pl.BlockSpec((blk, cols), lambda i: (i, 0))
    res_spec = lambda arr: pl.BlockSpec(arr.shape, lambda i: (0, 0))  # resident

    flops = 2 * bp * (k_in * hidden + hidden * hidden + hidden * 2 * out_size)
    transcendentals = 5 * bp * out_size            # 2x softplus (exp+log1p) + exp
    bytes_accessed = 4 * (xa.size + xpad.size + eps.size + bp * out_size) + sum(
        int(p.size) * p.dtype.itemsize
        for p in (w1, b1, w2, b2, whead, bhead, max_ls, min_ls))

    out = pl.pallas_call(
        dynamics_kernel,
        out_shape=jax.ShapeDtypeStruct((bp, out_size), jnp.float32),
        grid_spec=pltpu.PrefetchScalarGridSpec(
            num_scalar_prefetch=0,
            grid=grid,
            in_specs=[
                row_spec(k_in),          # xa
                row_spec(out_size),      # xpad
                row_spec(out_size),      # eps
                res_spec(w1), res_spec(b1),
                res_spec(w2), res_spec(b2),
                res_spec(whead), res_spec(bhead),
                res_spec(max_ls), res_spec(min_ls),
            ],
            out_specs=row_spec(out_size),
        ),
        compiler_params=pltpu.CompilerParams(
            dimension_semantics=("parallel",)),
        cost_estimate=pl.CostEstimate(
            flops=int(flops),
            transcendentals=int(transcendentals),
            bytes_accessed=int(bytes_accessed)),
    )(xa, xpad, eps, w1, b1, w2, b2, whead, bhead, max_ls, min_ls)

    # out = [x + pred[:, :-1] | pred[:, -1]]  -> slice outside the kernel
    next_x = out[:B, :obs_size]
    next_reward = out[:B, obs_size:]
    return next_x, next_reward


# ---------------------------------------------------------------------------
# glue: deterministic parameter construction (replaces checkpoint loading)
# ---------------------------------------------------------------------------
def _spectral_normalize(w):
    # torch.nn.utils.spectral_norm divides the weight by its largest singular
    # value (estimated by power iteration); we use the exact spectral norm.
    sigma = jnp.linalg.norm(w, ord=2)
    return w / sigma


def _reference_forward(x, action, eps, params):
    w1, b1, w2, b2, whead, bhead, max_ls, min_ls = params
    out_size = x.shape[1] + 1
    xa = jnp.concatenate([x, action], axis=1)
    h = jnp.maximum(xa @ w1 + b1, 0.0)
    h = jnp.maximum(h @ w2 + b2, 0.0)
    head = h @ whead + bhead
    mu, logstd = head[:, :out_size], head[:, out_size:]
    logstd = max_ls - jax.nn.softplus(max_ls - logstd)
    logstd = min_ls + jax.nn.softplus(logstd - min_ls)
    pred = mu + jnp.exp(logstd) * eps
    return x + pred[:, :-1], pred[:, -1:].reshape(-1, 1)


if __name__ == "__main__":
    B, obs_size, act_size, hidden = 8, 16, 8, 32
    out_size = obs_size + 1

    key = jax.random.PRNGKey(0)
    ks = jax.random.split(key, 16)

    def init(k, shape, scale=0.1):
        return (scale * jax.random.normal(k, shape)).astype(jnp.float32)

    # encoder layer 1 (spectral-norm'd), acting on concat(x, action)
    w1 = _spectral_normalize(init(ks[0], (obs_size + act_size, hidden)))
    b1 = init(ks[1], (1, hidden))
    # encoder layer 2 (spectral-norm'd)
    w2 = _spectral_normalize(init(ks[2], (hidden, hidden)))
    b2 = init(ks[3], (1, hidden))
    # mu head (spectral-norm'd) and logstd head (plain Linear), fused
    wmu = _spectral_normalize(init(ks[4], (hidden, out_size)))
    bmu = init(ks[5], (1, out_size))
    wls = init(ks[6], (hidden, out_size))
    bls = init(ks[7], (1, out_size))
    whead = jnp.concatenate([wmu, wls], axis=1)     # (hidden, 2*out_size)
    bhead = jnp.concatenate([bmu, bls], axis=1)     # (1, 2*out_size)
    # bounded-logstd parameters, as in __init__
    max_logstd = jnp.full((1, out_size), 2.0, dtype=jnp.float32)
    min_logstd = jnp.full((1, out_size), -10.0, dtype=jnp.float32)

    params = (w1, b1, w2, b2, whead, bhead, max_logstd, min_logstd)

    x = jax.random.normal(ks[8], (B, obs_size), dtype=jnp.float32)
    action = jax.random.normal(ks[9], (B, act_size), dtype=jnp.float32)
    # TODO(synk): rsample noise is drawn in plain JAX for determinism of the
    # reference check; could be generated in-kernel with pltpu.prng_seed +
    # pltpu.stateful_normal to drop the eps DMA stream at large batch.
    eps = jax.random.normal(ks[10], (B, out_size), dtype=jnp.float32)

    # --- f32 path (tight check) -------------------------------------------
    next_x, next_reward = dynamics_forward(x, action, eps, params)
    jax.block_until_ready((next_x, next_reward))
    ref_x, ref_r = _reference_forward(x, action, eps, params)
    assert next_x.shape == (B, obs_size) and next_reward.shape == (B, 1)
    assert jnp.allclose(next_x, ref_x, atol=1e-5, rtol=1e-5)
    assert jnp.allclose(next_reward, ref_r, atol=1e-5, rtol=1e-5)

    # --- bf16-matmul path (v6e/v7x MXU fast path, f32 accumulate) ----------
    nx16, rw16 = dynamics_forward(x, action, eps, params,
                                  matmul_dtype=jnp.bfloat16)
    jax.block_until_ready((nx16, rw16))
    assert jnp.allclose(nx16, ref_x, atol=1e-1, rtol=1e-1)
    assert jnp.allclose(rw16, ref_r, atol=1e-1, rtol=1e-1)

    # --- gridded / padded batch path (exercises grid=(2,) with 256-row blocks)
    B2 = 300
    x2 = jax.random.normal(ks[11], (B2, obs_size), dtype=jnp.float32)
    a2 = jax.random.normal(ks[12], (B2, act_size), dtype=jnp.float32)
    e2 = jax.random.normal(ks[13], (B2, out_size), dtype=jnp.float32)
    nx2, rw2 = dynamics_forward(x2, a2, e2, params)
    jax.block_until_ready((nx2, rw2))
    rx2, rr2 = _reference_forward(x2, a2, e2, params)
    assert nx2.shape == (B2, obs_size) and rw2.shape == (B2, 1)
    assert jnp.allclose(nx2, rx2, atol=1e-5, rtol=1e-5)
    assert jnp.allclose(rw2, rr2, atol=1e-5, rtol=1e-5)

    print("KERNEL_OK")
</pallas_src>

<mosaic_0001>
module attributes {stable_mosaic.version = 11 : i64} {
  func.func @dynamics_kernel(%arg0: i32, %arg1: memref<8x24xf32, #tpu.memory_space<vmem>>, %arg2: memref<8x17xf32, #tpu.memory_space<vmem>>, %arg3: memref<8x17xf32, #tpu.memory_space<vmem>>, %arg4: memref<24x32xf32, #tpu.memory_space<vmem>>, %arg5: memref<1x32xf32, #tpu.memory_space<vmem>>, %arg6: memref<32x32xf32, #tpu.memory_space<vmem>>, %arg7: memref<1x32xf32, #tpu.memory_space<vmem>>, %arg8: memref<32x34xf32, #tpu.memory_space<vmem>>, %arg9: memref<1x34xf32, #tpu.memory_space<vmem>>, %arg10: memref<1x17xf32, #tpu.memory_space<vmem>>, %arg11: memref<1x17xf32, #tpu.memory_space<vmem>>, %arg12: memref<8x17xf32, #tpu.memory_space<vmem>>) attributes {dimension_semantics = [#tpu.dimension_semantics<parallel>], iteration_bounds = array<i64: 1>, scalar_prefetch = 0 : i64, scratch_operands = 0 : i64, tpu.core_type = #tpu.core_type<tc>, window_params = [{transform_indices = @transform_0, window_bounds = array<i64: 8, 24>}, {transform_indices = @transform_1, window_bounds = array<i64: 8, 17>}, {transform_indices = @transform_2, window_bounds = array<i64: 8, 17>}, {pipeline_mode = #tpu.pipeline_mode<synchronous>, transform_indices = @transform_3, window_bounds = array<i64: 24, 32>}, {pipeline_mode = #tpu.pipeline_mode<synchronous>, transform_indices = @transform_4, window_bounds = array<i64: 1, 32>}, {pipeline_mode = #tpu.pipeline_mode<synchronous>, transform_indices = @transform_5, window_bounds = array<i64: 32, 32>}, {pipeline_mode = #tpu.pipeline_mode<synchronous>, transform_indices = @transform_6, window_bounds = array<i64: 1, 32>}, {pipeline_mode = #tpu.pipeline_mode<synchronous>, transform_indices = @transform_7, window_bounds = array<i64: 32, 34>}, {pipeline_mode = #tpu.pipeline_mode<synchronous>, transform_indices = @transform_8, window_bounds = array<i64: 1, 34>}, {pipeline_mode = #tpu.pipeline_mode<synchronous>, transform_indices = @transform_9, window_bounds = array<i64: 1, 17>}, {pipeline_mode = #tpu.pipeline_mode<synchronous>, transform_indices = @transform_10, window_bounds = array<i64: 1, 17>}, {transform_indices = @transform_11, window_bounds = array<i64: 8, 17>}]} {
    %c0 = arith.constant 0 : index
    %c0_0 = arith.constant 0 : index
    %0 = vector.load %arg1[%c0, %c0_0] : memref<8x24xf32, #tpu.memory_space<vmem>>, vector<8x24xf32>
    %c0_1 = arith.constant 0 : index
    %c0_2 = arith.constant 0 : index
    %1 = vector.load %arg4[%c0_1, %c0_2] : memref<24x32xf32, #tpu.memory_space<vmem>>, vector<24x32xf32>
    %cst = arith.constant dense<0.000000e+00> : vector<8x32xf32>
    %2 = tpu.matmul %0, %1, %cst {dimension_numbers = #tpu.dot_dimension_numbers<[1], [0], [0], [1], [0, 0, 1, 1], [], []>} : vector<8x24xf32>, vector<24x32xf32>, vector<8x32xf32> -> vector<8x32xf32>
    %c0_3 = arith.constant 0 : index
    %c0_4 = arith.constant 0 : index
    %3 = vector.load %arg5[%c0_3, %c0_4] : memref<1x32xf32, #tpu.memory_space<vmem>>, vector<1x32xf32>
    %4 = vector.broadcast %3 : vector<1x32xf32> to vector<8x32xf32>
    %5 = arith.addf %2, %4 : vector<8x32xf32>
    %cst_5 = arith.constant 0.000000e+00 : f32
    %6 = vector.broadcast %cst_5 : f32 to vector<8x32xf32>
    %7 = arith.maximumf %5, %6 : vector<8x32xf32>
    %c0_6 = arith.constant 0 : index
    %c0_7 = arith.constant 0 : index
    %8 = vector.load %arg6[%c0_6, %c0_7] : memref<32x32xf32, #tpu.memory_space<vmem>>, vector<32x32xf32>
    %cst_8 = arith.constant dense<0.000000e+00> : vector<8x32xf32>
    %9 = tpu.matmul %7, %8, %cst_8 {dimension_numbers = #tpu.dot_dimension_numbers<[1], [0], [0], [1], [0, 0, 1, 1], [], []>} : vector<8x32xf32>, vector<32x32xf32>, vector<8x32xf32> -> vector<8x32xf32>
    %c0_9 = arith.constant 0 : index
    %c0_10 = arith.constant 0 : index
    %10 = vector.load %arg7[%c0_9, %c0_10] : memref<1x32xf32, #tpu.memory_space<vmem>>, vector<1x32xf32>
    %11 = vector.broadcast %10 : vector<1x32xf32> to vector<8x32xf32>
    %12 = arith.addf %9, %11 : vector<8x32xf32>
    %cst_11 = arith.constant 0.000000e+00 : f32
    %13 = vector.broadcast %cst_11 : f32 to vector<8x32xf32>
    %14 = arith.maximumf %12, %13 : vector<8x32xf32>
    %c0_12 = arith.constant 0 : index
    %c0_13 = arith.constant 0 : index
    %15 = vector.load %arg8[%c0_12, %c0_13] : memref<32x34xf32, #tpu.memory_space<vmem>>, vector<32x34xf32>
    %cst_14 = arith.constant dense<0.000000e+00> : vector<8x34xf32>
    %16 = tpu.matmul %14, %15, %cst_14 {dimension_numbers = #tpu.dot_dimension_numbers<[1], [0], [0], [1], [0, 0, 1, 1], [], []>} : vector<8x32xf32>, vector<32x34xf32>, vector<8x34xf32> -> vector<8x34xf32>
    %c0_15 = arith.constant 0 : index
    %c0_16 = arith.constant 0 : index
    %17 = vector.load %arg9[%c0_15, %c0_16] : memref<1x34xf32, #tpu.memory_space<vmem>>, vector<1x34xf32>
    %18 = vector.broadcast %17 : vector<1x34xf32> to vector<8x34xf32>
    %19 = arith.addf %16, %18 : vector<8x34xf32>
    %20 = vector.extract_strided_slice %19 {offsets = [0, 0], sizes = [8, 17], strides = [1, 1]} : vector<8x34xf32> to vector<8x17xf32>
    %21 = vector.extract_strided_slice %19 {offsets = [0, 17], sizes = [8, 17], strides = [1, 1]} : vector<8x34xf32> to vector<8x17xf32>
    %c0_17 = arith.constant 0 : index
    %c0_18 = arith.constant 0 : index
    %22 = vector.load %arg10[%c0_17, %c0_18] : memref<1x17xf32, #tpu.memory_space<vmem>>, vector<1x17xf32>
    %c0_19 = arith.constant 0 : index
    %c0_20 = arith.constant 0 : index
    %23 = vector.load %arg11[%c0_19, %c0_20] : memref<1x17xf32, #tpu.memory_space<vmem>>, vector<1x17xf32>
    %24 = vector.broadcast %22 : vector<1x17xf32> to vector<8x17xf32>
    %25 = arith.subf %24, %21 : vector<8x17xf32>
    %26 = math.absf %25 : vector<8x17xf32>
    %cst_21 = arith.constant 0.000000e+00 : f32
    %27 = vector.broadcast %cst_21 : f32 to vector<8x17xf32>
    %28 = arith.subf %27, %26 : vector<8x17xf32>
    %29 = math.exp %28 : vector<8x17xf32>
    %30 = math.log1p %29 : vector<8x17xf32>
    %cst_22 = arith.constant 0.000000e+00 : f32
    %31 = vector.broadcast %cst_22 : f32 to vector<8x17xf32>
    %32 = arith.maximumf %25, %31 : vector<8x17xf32>
    %33 = arith.addf %30, %32 : vector<8x17xf32>
    %34 = vector.broadcast %22 : vector<1x17xf32> to vector<8x17xf32>
    %35 = arith.subf %34, %33 : vector<8x17xf32>
    %36 = vector.broadcast %23 : vector<1x17xf32> to vector<8x17xf32>
    %37 = arith.subf %35, %36 : vector<8x17xf32>
    %38 = math.absf %37 : vector<8x17xf32>
    %cst_23 = arith.constant 0.000000e+00 : f32
    %39 = vector.broadcast %cst_23 : f32 to vector<8x17xf32>
    %40 = arith.subf %39, %38 : vector<8x17xf32>
    %41 = math.exp %40 : vector<8x17xf32>
    %42 = math.log1p %41 : vector<8x17xf32>
    %cst_24 = arith.constant 0.000000e+00 : f32
    %43 = vector.broadcast %cst_24 : f32 to vector<8x17xf32>
    %44 = arith.maximumf %37, %43 : vector<8x17xf32>
    %45 = arith.addf %42, %44 : vector<8x17xf32>
    %46 = vector.broadcast %23 : vector<1x17xf32> to vector<8x17xf32>
    %47 = arith.addf %46, %45 : vector<8x17xf32>
    %48 = math.exp %47 : vector<8x17xf32>
    %c0_25 = arith.constant 0 : index
    %c0_26 = arith.constant 0 : index
    %49 = vector.load %arg3[%c0_25, %c0_26] : memref<8x17xf32, #tpu.memory_space<vmem>>, vector<8x17xf32>
    %50 = arith.mulf %48, %49 : vector<8x17xf32>
    %51 = arith.addf %20, %50 : vector<8x17xf32>
    %c0_27 = arith.constant 0 : index
    %c0_28 = arith.constant 0 : index
    %52 = vector.load %arg2[%c0_27, %c0_28] : memref<8x17xf32, #tpu.memory_space<vmem>>, vector<8x17xf32>
    %53 = arith.addf %52, %51 : vector<8x17xf32>
    %c0_29 = arith.constant 0 : index
    %c0_30 = arith.constant 0 : index
    %54 = vector.load %arg12[%c0_29, %c0_30] : memref<8x17xf32, #tpu.memory_space<vmem>>, vector<8x17xf32>
    tpu.vector_store %arg12[%c0_29, %c0_30], %53 {strides = array<i32>} : memref<8x17xf32, #tpu.memory_space<vmem>>, vector<8x17xf32>,
    return
  }
  func.func @transform_0(%arg0: i32) -> (i32, i32) {
    %c0_i32 = arith.constant 0 : i32
    %c0_i32_0 = arith.constant 0 : i32
    return %arg0, %c0_i32 : i32, i32
  }
  func.func @transform_1(%arg0: i32) -> (i32, i32) {
    %c0_i32 = arith.constant 0 : i32
    %c0_i32_0 = arith.constant 0 : i32
    return %arg0, %c0_i32 : i32, i32
  }
  func.func @transform_2(%arg0: i32) -> (i32, i32) {
    %c0_i32 = arith.constant 0 : i32
    %c0_i32_0 = arith.constant 0 : i32
    return %arg0, %c0_i32 : i32, i32
  }
  func.func @transform_3(%arg0: i32) -> (i32, i32) {
    %c0_i32 = arith.constant 0 : i32
    %c0_i32_0 = arith.constant 0 : i32
    %c0_i32_1 = arith.constant 0 : i32
    return %c0_i32, %c0_i32_0 : i32, i32
  }
  func.func @transform_4(%arg0: i32) -> (i32, i32) {
    %c0_i32 = arith.constant 0 : i32
    %c0_i32_0 = arith.constant 0 : i32
    %c0_i32_1 = arith.constant 0 : i32
    return %c0_i32, %c0_i32_0 : i32, i32
  }
  func.func @transform_5(%arg0: i32) -> (i32, i32) {
    %c0_i32 = arith.constant 0 : i32
    %c0_i32_0 = arith.constant 0 : i32
    %c0_i32_1 = arith.constant 0 : i32
    return %c0_i32, %c0_i32_0 : i32, i32
  }
  func.func @transform_6(%arg0: i32) -> (i32, i32) {
    %c0_i32 = arith.constant 0 : i32
    %c0_i32_0 = arith.constant 0 : i32
    %c0_i32_1 = arith.constant 0 : i32
    return %c0_i32, %c0_i32_0 : i32, i32
  }
  func.func @transform_7(%arg0: i32) -> (i32, i32) {
    %c0_i32 = arith.constant 0 : i32
    %c0_i32_0 = arith.constant 0 : i32
    %c0_i32_1 = arith.constant 0 : i32
    return %c0_i32, %c0_i32_0 : i32, i32
  }
  func.func @transform_8(%arg0: i32) -> (i32, i32) {
    %c0_i32 = arith.constant 0 : i32
    %c0_i32_0 = arith.constant 0 : i32
    %c0_i32_1 = arith.constant 0 : i32
    return %c0_i32, %c0_i32_0 : i32, i32
  }
  func.func @transform_9(%arg0: i32) -> (i32, i32) {
    %c0_i32 = arith.constant 0 : i32
    %c0_i32_0 = arith.constant 0 : i32
    %c0_i32_1 = arith.constant 0 : i32
    return %c0_i32, %c0_i32_0 : i32, i32
  }
  func.func @transform_10(%arg0: i32) -> (i32, i32) {
    %c0_i32 = arith.constant 0 : i32
    %c0_i32_0 = arith.constant 0 : i32
    %c0_i32_1 = arith.constant 0 : i32
    return %c0_i32, %c0_i32_0 : i32, i32
  }
  func.func @transform_11(%arg0: i32) -> (i32, i32) {
    %c0_i32 = arith.constant 0 : i32
    %c0_i32_0 = arith.constant 0 : i32
    return %arg0, %c0_i32 : i32, i32
  }
}

</mosaic_0001>

<bundles_post_ra>
// kernel: tpu_custom_call.1
= control target key start
LH: loop header
LB: loop body
LE: loop exit
PB: predicated region body
PF: predicated region fallthrough
CT: control target
= control target key end

     0   :  { %16 = vsyncpa [#allocation3], 0  ;;  %s903_s0 = inlined_call_operand.hbm [shape: f32[8,24], index: 0, kind: input, shape index: {}]   ;;  %s904_s1 = inlined_call_operand.hbm [shape: f32[8,17], index: 1, kind: input, shape index: {}]   ;;  %s905_s2 = inlined_call_operand.hbm [shape: f32[8,17], index: 2, kind: input, shape index: {}]   ;;  %s906_s3 = inlined_call_operand.hbm [shape: f32[24,32], index: 3, kind: input, shape index: {}]   ;;  %s907_s4 = inlined_call_operand.vmem [shape: f32[1,32], index: 4, kind: input, shape index: {}]   ;;  %s908_s5 = inlined_call_operand.hbm [shape: f32[32,32], index: 5, kind: input, shape index: {}]   ;;  %s909_s6 = inlined_call_operand.vmem [shape: f32[1,32], index: 6, kind: input, shape index: {}]   ;;  %s910_s7 = inlined_call_operand.hbm [shape: f32[32,34], index: 7, kind: input, shape index: {}]   ;;  %s911_s8 = inlined_call_operand.vmem [shape: f32[1,34], index: 8, kind: input, shape index: {}]   ;;  %s912_s9 = inlined_call_operand.vmem [shape: f32[1,17], index: 9, kind: input, shape index: {}]   ;;  %s913_s10 = inlined_call_operand.vmem [shape: f32[1,17], index: 10, kind: input, shape index: {}]   ;;  %s914_s11 = inlined_call_operand.hbm [shape: f32[8,17], index: 11, kind: output, shape index: {}]  }
   0x1   :  { %17 = vsyncpa [#allocation6], 0 }
   0x2   :  { %18 = vsyncpa [#allocation9], 0 }
   0x3   :  { %19 = vsyncpa [#allocation12], 0 }
   0x4   :  { %20 = vsyncpa [#allocation4], 0  ;;  %s705_s17 = smov [#allocation5]   ;;  %s706_s19 = smov [#allocation8]  }
   0x5   :  { %s37_s18 = sshll.u32 %s705_s17, 4  ;;  %s56_s20 = sshll.u32 %s706_s19, 4  ;;  %s38_s18 = int_to_ptr.vmem [resolvable:$true] %s37_s18  ;;  %s778_s20 = int_to_ptr.vmem [resolvable:$true] %s56_s20 }
   0x6   :  { %s541_s23 = scalar_lea.hbm %s904_s1, 128 }
   0x7   :  { %p542_p0 = scmp.ne.s32.totalorder %s904_s1, %s541_s23  ;;  %p545_p1 = scmp.lt.u32.totalorder %s541_s23, %s904_s1 }
   0x9   :  { %p547_p2 = pnand %p545_p1, %p542_p0 }
   0xb   :  { %550 = shalt.err (!%p547_p2)
}
   0xc   :  { %s551_s28 = scalar_lea.vmem %s38_s18, 128  ;;  %p556_p4 = scmp.lt.s32.totalorder %s38_s18, %s38_s18 }
   0xd   :  { %p552_p3 = scmp.ne.s32.totalorder %s38_s18, %s551_s28  ;;  %p557_p5 = scmp.lt.s32.totalorder %s551_s28, %s551_s28 }
   0xf   :  { %p558_p6 = por %p557_p5, %p556_p4 }
  0x11   :  { %p559_p7 = pnand %p558_p6, %p552_p3 }
  0x13   :  { %562 = shalt.err (!%p559_p7)
}
  0x14   :  { %40 = dma.hbm_to_vmem [thread:$0]  %s904_s1, 128, %s38_s18, [#allocation6]  }
  0x15   :  { %s563_s14 = scalar_lea.hbm %s906_s3, 384 }
  0x16   :  { %p564_p8 = scmp.ne.s32.totalorder %s906_s3, %s563_s14  ;;  %p567_p9 = scmp.lt.u32.totalorder %s563_s14, %s906_s3 }
  0x18   :  { %p569_p10 = pnand %p567_p9, %p564_p8 }
  0x1a   :  { %572 = shalt.err (!%p569_p10)
}
  0x1b   :  { %s573_s21 = scalar_lea.vmem %s778_s20, 384  ;;  %p578_p12 = scmp.lt.s32.totalorder %s778_s20, %s778_s20 }
  0x1c   :  { %p574_p11 = scmp.ne.s32.totalorder %s778_s20, %s573_s21  ;;  %p579_p13 = scmp.lt.s32.totalorder %s573_s21, %s573_s21 }
  0x1e   :  { %p580_p0 = por %p579_p13, %p578_p12 }
  0x20   :  { %p581_p1 = pnand %p580_p0, %p574_p11 }
  0x22   :  { %584 = shalt.err (!%p581_p1)
}
  0x23   :  { %s707_s1 = smov 128   ;;  %s708_s18 = smov 8  }
  0x24   :  { %62 = dma.hbm_to_vmem [thread:$0]  %s906_s3, 384, %s778_s20, [#allocation9], %s707_s1, %s707_s1, %s708_s18  }
  0x25   :  { %s709_s24 = smov [#allocation2]   ;;  %s710_s26 = smov [#allocation7]  }
  0x26   :  { %s27_s25 = sshll.u32 %s709_s24, 4  ;;  %s47_s27 = sshll.u32 %s710_s26, 4  ;;  %s28_s25 = int_to_ptr.vmem [resolvable:$true] %s27_s25  ;;  %s48_s27 = int_to_ptr.vmem [resolvable:$true] %s47_s27 }
  0x27   :  { %s585_s30 = scalar_lea.hbm %s903_s0, 128 }
  0x28   :  { %p586_p2 = scmp.ne.s32.totalorder %s903_s0, %s585_s30  ;;  %p589_p3 = scmp.lt.u32.totalorder %s585_s30, %s903_s0 }
  0x2a   :  { %p591_p4 = pnand %p589_p3, %p586_p2 }
  0x2c   :  { %594 = shalt.err (!%p591_p4)
}
  0x2d   :  { %s595_s3 = scalar_lea.vmem %s28_s25, 128  ;;  %p600_p6 = scmp.lt.s32.totalorder %s28_s25, %s28_s25 }
  0x2e   :  { %p596_p5 = scmp.ne.s32.totalorder %s28_s25, %s595_s3  ;;  %p601_p7 = scmp.lt.s32.totalorder %s595_s3, %s595_s3 }
  0x30   :  { %p602_p8 = por %p601_p7, %p600_p6 }
  0x32   :  { %p603_p9 = pnand %p602_p8, %p596_p5 }
  0x34   :  { %606 = shalt.err (!%p603_p9)
}
  0x35   :  { %30 = dma.hbm_to_vmem [thread:$0]  %s903_s0, 128, %s28_s25, [#allocation3]  }
  0x36   :  { %s607_s21 = scalar_lea.hbm %s905_s2, 128 }
  0x37   :  { %p608_p10 = scmp.ne.s32.totalorder %s905_s2, %s607_s21  ;;  %p611_p11 = scmp.lt.u32.totalorder %s607_s21, %s905_s2 }
  0x39   :  { %p613_p12 = pnand %p611_p11, %p608_p10 }
  0x3b   :  { %616 = shalt.err (!%p613_p12)
}
  0x3c   :  { %s617_s28 = scalar_lea.vmem %s48_s27, 128  ;;  %p622_p0 = scmp.lt.s32.totalorder %s48_s27, %s48_s27 }
  0x3d   :  { %p618_p13 = scmp.ne.s32.totalorder %s48_s27, %s617_s28  ;;  %p623_p1 = scmp.lt.s32.totalorder %s617_s28, %s617_s28 }
  0x3f   :  { %p624_p2 = por %p623_p1, %p622_p0 }
  0x41   :  { %p625_p3 = pnand %p624_p2, %p618_p13 }
  0x43   :  { %628 = shalt.err (!%p625_p3)
}
  0x44   :  { %50 = dma.hbm_to_vmem [thread:$0]  %s905_s2, 128, %s48_s27, [#allocation6]  }
  0x45   :  { %s711_s29 = smov [#allocation10]   ;;  %s712_s12 = smov [#allocation11]  }
  0x46   :  { %s70_s30 = sshll.u32 %s711_s29, 4  ;;  %s84_s13 = sshll.u32 %s712_s12, 4  ;;  %s71_s30 = int_to_ptr.vmem [resolvable:$true] %s70_s30  ;;  %s836_s13 = int_to_ptr.vmem [resolvable:$true] %s84_s13 }
  0x47   :  { %s629_s3 = scalar_lea.hbm %s908_s5, 512 }
  0x48   :  { %p630_p4 = scmp.ne.s32.totalorder %s908_s5, %s629_s3  ;;  %p633_p5 = scmp.lt.u32.totalorder %s629_s3, %s908_s5 }
  0x4a   :  { %p635_p6 = pnand %p633_p5, %p630_p4 }
  0x4c   :  { %638 = shalt.err (!%p635_p6)
}
  0x4d   :  { %s639_s2 = scalar_lea.vmem %s71_s30, 512  ;;  %p644_p8 = scmp.lt.s32.totalorder %s71_s30, %s71_s30 }
  0x4e   :  { %p640_p7 = scmp.ne.s32.totalorder %s71_s30, %s639_s2  ;;  %p645_p9 = scmp.lt.s32.totalorder %s639_s2, %s639_s2 }
  0x50   :  { %p646_p10 = por %p645_p9, %p644_p8 }
  0x52   :  { %p647_p11 = pnand %p646_p10, %p640_p7 }
  0x54   :  { %650 = shalt.err (!%p647_p11)
}
  0x55   :  { %76 = dma.hbm_to_vmem [thread:$0]  %s908_s5, 512, %s71_s30, [#allocation9], %s707_s1, %s707_s1, %s708_s18  }
  0x56   :  { %s651_s24 = scalar_lea.hbm %s910_s7, 512 }
  0x57   :  { %p652_p12 = scmp.ne.s32.totalorder %s910_s7, %s651_s24  ;;  %p655_p13 = scmp.lt.u32.totalorder %s651_s24, %s910_s7 }
  0x59   :  { %p657_p0 = pnand %p655_p13, %p652_p12 }
  0x5b   :  { %660 = shalt.err (!%p657_p0)
}
  0x5c   :  { %s661_s29 = scalar_lea.vmem %s836_s13, 512  ;;  %p666_p2 = scmp.lt.s32.totalorder %s836_s13, %s836_s13 }
  0x5d   :  { %p662_p1 = scmp.ne.s32.totalorder %s836_s13, %s661_s29  ;;  %p667_p3 = scmp.lt.s32.totalorder %s661_s29, %s661_s29 }
  0x5f   :  { %p668_p4 = por %p667_p3, %p666_p2 }
  0x61   :  { %p669_p5 = pnand %p668_p4, %p662_p1 }
  0x63   :  { %672 = shalt.err (!%p669_p5)
}
  0x64   :  { %90 = dma.hbm_to_vmem [thread:$0]  %s910_s7, 512, %s836_s13, [#allocation12], %s707_s1, %s707_s1, %s708_s18  }
  0x65   :  { %695 = dma.done.wait [#allocation3], 128  }
  0x66   :  { %696 = vsyncadd [#allocation3], 4294967168 }
  0x67   :  { %697 = dma.done.wait [#allocation6], 256  }
  0x68   :  { %698 = vsyncadd [#allocation6], 4294967040 }
  0x69   :  { %699 = dma.done.wait [#allocation9], 896  }
  0x6a   :  { %700 = vsyncadd [#allocation9], 4294966400 }
  0x6b   :  { %701 = dma.done.wait [#allocation12], 512  }
  0x6c   :  { %702 = vsyncadd [#allocation12], 4294966784  ;;  %v713_v0 = vmov 0.0|0.0   ;;  %vm714_vm0 = vmmov 0   ;;  %v715_v1 = vmov 0.0   ;;  %v116_v2 = vld [vmem:[#allocation8] sm:$0xff] }
  0x6d   :  { %503 = vmatprep.subr.bf16.mxu0 %v713_v0  ;;  %478 = vmatprep.mubr.msk.f32.mxu0 %vm714_vm0, %v715_v1  ;;  %v117_v3 = vld [vmem:[#allocation8 + $0x8] sm:$0xff]  ;;  %v201_v5 = vld [vmem:[#allocation10] sm:$0xff]  ;;  %v202_v6 = vld [vmem:[#allocation10 + $0x8] sm:$0xff]  ;;  %vm126_vm1 = vcmask 195584   ;;  %vm212_vm2 = vcmask 261120   ;;  %s716_s14 = smov 111  }
  0x6e   :  { %506 = vmatprep.subr.bf16.mxu1 %v713_v0  ;;  %489 = vmatprep.mubr.msk.f32.mxu1 %vm714_vm0, %v715_v1  ;;  %v504_v4 = vpack.c.bf16 %v117_v3, %v116_v2  ;;  %v507_v7 = vpack.c.bf16 %v202_v6, %v201_v5  ;;  %v118_v8 = vld [vmem:[#allocation8 + $0x10] sm:$0xff]  ;;  %v115_v9 = vld [vmem:[#allocation2] sm:$0xff]  ;;  %v287_v13 = vld [vmem:[#allocation11] sm:$0xff]  ;;  %vm430_vm5 = vcmask 138240  }
  0x6f   :  { %v203_v10 = vld [vmem:[#allocation10 + $0x10] sm:$0xff]  ;;  %v204_v11 = vld [vmem:[#allocation10 + $0x18] sm:$0xff]  ;;  %v288_v14 = vld [vmem:[#allocation11 + $0x8] sm:$0xff] }
  0x70   :  { %505 = vmatpush3.bf16.msra.mxu0 %v504_v4  ;;  %508 = vmatpush3.bf16.msra.mxu1 %v507_v7  ;;  %v510_v12 = vpack.c.bf16 %v204_v11, %v203_v10  ;;  %v513_v15 = vpack.c.bf16 %v288_v14, %v287_v13  ;;  %v450_v16 = vld [vmem:[%s907_s4] ss:$0 sm:$0xff]  ;;  %v290_v22 = vld [vmem:[#allocation11 + $0x18] sm:$0xff]  ;;  %v425_v5 = vld [vmem:[#allocation7] sm:$0xff] }
  0x71   :  { %476 = vmatprep.subr.mxu0 %v715_v1  ;;  %509 = vmatprep.subr.bf16.mxu1 %v713_v0  ;;  %v289_v21 = vld [vmem:[#allocation11 + $0x10] sm:$0xff] }
  0x72   :  { %v516_v23 = vpack.c.bf16 %v290_v22, %v289_v21  ;;  %v452_v24 = vld [vmem:[%s909_s6] ss:$0 sm:$0xff] }
  0x73   :  { %v454_v29 = vld [vmem:[%s911_s8] ss:$0 sm:$0xff] }
  0x74   :  { %477 = vmatpush3.msra.mxu0 %v118_v8  ;;  %511 = vmatpush3.bf16.msra.mxu1 %v510_v12  ;;  %v456_v33 = vld [vmem:[%s912_s9] ss:$0 sm:$0xff]  ;;  %v428_v8 = vld [vmem:[#allocation5] sm:$0xff]  ;;  %s717_s9 = smov [#allocation13]  }
  0x75   :  { %479 = vmatmul.mubr.msk.f32.vlgmr.msra.gmra.mrb[0].mxu0 %vm126_vm1, %v115_v9  ;;  %512 = vmatprep.subr.bf16.mxu0 %v713_v0  ;;  %v457_v50 = vld [vmem:[%s913_s10] ss:$0 sm:$0xff]  ;;  %s438_s10 = sshll.u32 %s717_s9, 4  ;;  %s439_s10 = int_to_ptr.vmem [resolvable:$true] %s438_s10 }
  0x76   :  { %500 = vmatprep.mubr.msk.f32.mxu0 %vm714_vm0, %v715_v1  ;;  %514 = vmatpush3.bf16.msra.mxu0 %v513_v15  ;;  %s673_s20 = scalar_lea.vmem %s439_s10, 128  ;;  %p678_p7 = scmp.lt.s32.totalorder %s439_s10, %s439_s10 }
  0x77   :  { %515 = vmatprep.subr.bf16.mxu0 %v713_v0  ;;  %p674_p6 = scmp.ne.s32.totalorder %s439_s10, %s673_s20  ;;  %p679_p8 = scmp.lt.s32.totalorder %s673_s20, %s673_s20 }
  0x79   :  { %p680_p9 = por %p679_p8, %p678_p7 }
  0x7a   :  { %517 = vmatpush3.bf16.msra.mxu0 %v516_v23 }
  0x7b   :  { %p681_p10 = pnand %p680_p9, %p674_p6 }
 0x148   :  { %v196_v17 = vpop.f32.mrb[0].mxu0 }
 0x149   :  { %v197_v18 = vadd.f32 %v450_v16, %v196_v17  ;;  %v480_v19 = vpop.f32.mrb[1].mxu0 }
 0x14b   :  { %v200_v20 = vmax.f32 %v197_v18, 0.0 }
 0x14d   :  { %490 = vmatmul.mubr.msk.f32.vlgmr.msra.gmra.mrb[0].mxu1 %vm212_vm2, %v200_v20 }
 0x220   :  { %v282_v25 = vpop.f32.mrb[0].mxu1 }
 0x221   :  { %v283_v26 = vadd.f32 %v452_v24, %v282_v25  ;;  %v491_v27 = vpop.f32.mrb[1].mxu1 }
 0x223   :  { %v286_v28 = vmax.f32 %v283_v26, 0.0 }
 0x225   :  { %501 = vmatmul.mubr.msk.f32.vlgmr.msra.gmra.mrb[2].mxu0 %vm212_vm2, %v286_v28 }
 0x2f8   :  { %v367_v30 = vpop.f32.mrb[2].mxu0 }
 0x2f9   :  { %v368_v31 = vadd.f32 %v454_v29, %v367_v30  ;;  %v502_v32 = vpop.f32.mrb[3].mxu0 }
 0x2fb   :  { %380 = vrot.lane.b32.xlu0 %v368_v31, %s716_s14 }
 0x36d   :  { %v381_v34 = vpop.permute.xlu0 %380 }
 0x36e   :  { %v383_v35 = vsub.f32 %v456_v33, %v381_v34 }
 0x370   :  { %v384_v36 = vand.u32 2147483647, %v383_v35  ;;  %v397_v47 = vmax.f32 %v383_v35, 0.0 }
 0x372   :  { %v385_v37 = vsub.f32 0.0, %v384_v36 }
 0x374   :  { %v386_v38 = vmul.f32 1.442695, %v385_v37 }
 0x376   :  { %531 = vpow2.f32 %v386_v38 }
 0x380   :  { %v532_v39 = vpop.eup %531 }
 0x381   :  { %v388_v40 = vadd.f32 1.0, %v532_v39  ;;  %v391_v41 = vmul.f32 -0.5, %v532_v39  ;;  %v394_v43 = vand.u32 2147483647, %v532_v39 }
 0x383   :  { %533 = vlog2.f32 %v388_v40  ;;  %v392_v42 = vadd.f32 1.0, %v391_v41  ;;  %vm395_vm3 = vcmp.lt.f32.partialorder %v394_v43, 0.0004427343 }
 0x385   :  { %v393_v46 = vmul.f32 %v532_v39, %v392_v42 }
 0x38d   :  { %v534_v44 = vpop.eup %533 }
 0x38e   :  { %v390_v45 = vmul.f32 0.6931472, %v534_v44 }
 0x390   :  { %v396_v48 = vsel %vm395_vm3, %v393_v46, %v390_v45 }
 0x391   :  { %v398_v49 = vadd.f32 %v397_v47, %v396_v48 }
 0x393   :  { %v399_v51 = vsub.f32 %v456_v33, %v398_v49 }
 0x395   :  { %v406_v52 = vsub.f32 %v399_v51, %v457_v50 }
 0x397   :  { %v407_v53 = vand.u32 2147483647, %v406_v52  ;;  %v420_v0 = vmax.f32 %v406_v52, 0.0 }
 0x399   :  { %v408_v54 = vsub.f32 0.0, %v407_v53 }
 0x39b   :  { %v409_v55 = vmul.f32 1.442695, %v408_v54 }
 0x39d   :  { %535 = vpow2.f32 %v409_v55 }
 0x3a7   :  { %v536_v56 = vpop.eup %535 }
 0x3a8   :  { %v411_v57 = vadd.f32 1.0, %v536_v56  ;;  %v414_v58 = vmul.f32 -0.5, %v536_v56  ;;  %v417_v60 = vand.u32 2147483647, %v536_v56 }
 0x3aa   :  { %537 = vlog2.f32 %v411_v57  ;;  %v415_v59 = vadd.f32 1.0, %v414_v58  ;;  %vm418_vm4 = vcmp.lt.f32.partialorder %v417_v60, 0.0004427343 }
 0x3ac   :  { %v416_v63 = vmul.f32 %v536_v56, %v415_v59 }
 0x3b4   :  { %v538_v61 = vpop.eup %537 }
 0x3b5   :  { %v413_v62 = vmul.f32 0.6931472, %v538_v61 }
 0x3b7   :  { %v419_v1 = vsel %vm418_vm4, %v416_v63, %v413_v62 }
 0x3b8   :  { %v421_v2 = vadd.f32 %v420_v0, %v419_v1 }
 0x3ba   :  { %v422_v3 = vadd.f32 %v457_v50, %v421_v2 }
 0x3bc   :  { %v423_v4 = vmul.f32 1.442695, %v422_v3 }
 0x3be   :  { %539 = vpow2.f32 %v423_v4 }
 0x3c8   :  { %v540_v6 = vpop.eup %539 }
 0x3c9   :  { %v426_v7 = vmul.f32 %v540_v6, %v425_v5 }
 0x3cb   :  { %v427_v9 = vadd.f32 %v426_v7, %v368_v31 }
 0x3cd   :  { %v429_v10 = vadd.f32 %v428_v8, %v427_v9 }
 0x3cf   :  { %431 = vst.msk [vmem:[#allocation13] sm:$0xff] %vm430_vm5, %v429_v10 }
 0x3d0   :  { %684 = shalt.err (!%p681_p10)
}
 0x3d1   :  { %s685_s19 = scalar_lea.hbm %s914_s11, 128 }
 0x3d2   :  { %p686_p11 = scmp.ne.s32.totalorder %s914_s11, %s685_s19  ;;  %p689_p12 = scmp.lt.u32.totalorder %s685_s19, %s914_s11 }
 0x3d4   :  { %p691_p13 = pnand %p689_p12, %p686_p11 }
 0x3d6   :  { %694 = shalt.err (!%p691_p13)
}
 0x3d7   :  { %441 = dma.vmem_to_hbm [thread:$0]  %s439_s10, 128, %s914_s11, [#allocation4]  }
 0x3d8   :  { %703 = dma.done.wait [#allocation4], 128  }
 0x3d9   :  { %704 = vsyncadd [#allocation4], 4294967168 }
 0x3da   :  { %445 = vsyncpa [#allocation3], 1 }
 0x3db   :  { %446 = vsyncpa [#allocation6], 1 }
 0x3dc   :  { %447 = vsyncpa [#allocation9], 1 }
 0x3dd   :  { %448 = vsyncpa [#allocation12], 1 }
 0x3de   :  { %449 = vsyncpa [#allocation4], 1 }

</bundles_post_ra>
